<compile_context>
chip_gen: v7x
topology: tpu7x:2x2x1
jax: 0.10.0
libtpu: 0.0.40
codegen_flags: <defaults>
</compile_context>

<pallas_src>
import jax
import jax.numpy as jnp
from jax.experimental import pallas as pl
from jax.experimental.pallas import tpu as pltpu


def _round_up(x, m):
    return ((x + m - 1) // m) * m


def _choose_batch_tiling(B, max_batch_tile):
    """Pick (TB, n_tiles, B_pad).

    - B is padded only to a multiple of 8 (sublane granularity), never to a
      multiple of TB, so padded-row HBM waste stays tiny regardless of B.
    - Tiles divide B_pad evenly and never exceed max_batch_tile.
    - Whenever the batch can be split (>= 16 rows), use an even number of >= 2
      tiles so the 'parallel' grid axis keeps both v7x TensorCores busy.
    """
    B8 = _round_up(max(B, 1), 8)
    n_tiles = pl.cdiv(B8, max_batch_tile)
    if B8 >= 16:
        n_tiles = max(n_tiles, 2)
    if n_tiles > 1 and n_tiles % 2 != 0:
        n_tiles += 1
    B_pad = _round_up(B8, n_tiles * 8)
    TB = B_pad // n_tiles
    return TB, n_tiles, B_pad


def _softmax_linear_kernel(x_ref, wt_ref, b_ref, lin_ref, prob_ref):
    x = x_ref[...]            # (TB, 784)  f32 or bf16 tile, pipelined over batch
    wt = wt_ref[...]          # (784, 10)  pre-transposed weight, resident in VMEM
    b = b_ref[...]            # (1, 10)    bias row, resident in VMEM
    # linear = x @ W^T + b  == (W @ x^T + b)^T from the PyTorch forward.
    # bf16 x is promoted in-kernel (cheap VPU cast, hidden under the x DMA).
    lin = jnp.dot(x, wt, preferred_element_type=jnp.float32) + b   # (TB, 10)
    lin_ref[...] = lin
    # Numerically stable softmax over the class dim; reciprocal on the EUP.
    m = jnp.max(lin, axis=1, keepdims=True)
    e = jnp.exp(lin - m)
    denom = jnp.sum(e, axis=1, keepdims=True)
    prob_ref[...] = e * pl.reciprocal(denom, approx=True)


def simple_mnist_softmax(x_nchw, weight, bias, *, max_batch_tile=2048):
    """x_nchw: (B, 1, 28, 28); weight: (10, 784); bias: (10, 1).

    Returns (linear_transformation, final_probabilities), both (B, 10) f32,
    matching the PyTorch forward semantics (computed in f32; bf16 inputs are
    consumed directly without an extra wrapper-side cast pass).
    """
    B = x_nchw.shape[0]
    D = 28 * 28
    C = weight.shape[0]

    flattened = x_nchw.reshape(B, D)                             # nn.Flatten()
    if flattened.dtype != jnp.bfloat16:
        # f64 has no TPU path; anything non-bf16 runs f32 (no-op for f32 input).
        flattened = flattened.astype(jnp.float32)
    w_t = jnp.transpose(weight.astype(jnp.float32))              # (784, 10), once in XLA
    b_row = bias.reshape(1, C).astype(jnp.float32)               # broadcast over batch

    TB, n_tiles, B_pad = _choose_batch_tiling(B, max_batch_tile)
    if B_pad != B:
        flattened = jnp.pad(flattened, ((0, B_pad - B), (0, 0)))

    grid = (n_tiles,)

    lin, prob = pl.pallas_call(
        _softmax_linear_kernel,
        out_shape=(
            jax.ShapeDtypeStruct((B_pad, C), jnp.float32),
            jax.ShapeDtypeStruct((B_pad, C), jnp.float32),
        ),
        grid=grid,
        in_specs=[
            # x tile, double-buffered/pipelined over the batch grid axis.
            pl.BlockSpec((TB, D), lambda i: (i, 0)),
            # Resident weight / bias: constant index_map, never re-DMA'd ->
            # single buffer saves the pointless second VMEM buffer.
            pl.BlockSpec((D, C), lambda i: (0, 0), pipeline_mode=pl.Buffered(1)),
            pl.BlockSpec((1, C), lambda i: (0, 0), pipeline_mode=pl.Buffered(1)),
        ],
        out_specs=(
            pl.BlockSpec((TB, C), lambda i: (i, 0)),
            pl.BlockSpec((TB, C), lambda i: (i, 0)),
        ),
        compiler_params=pltpu.CompilerParams(
            dimension_semantics=("parallel",),   # megacore sharding on v7x
            # TB=2048 f32 x tiles (lane-padded 784->896) need ~14.7 MB double
            # buffered plus ~4 MB of output buffers: above v5e's 16 MiB default
            # scoped VMEM, comfortably under v7x's 64 MiB/TC physical VMEM.
            vmem_limit_bytes=32 * 1024 * 1024,
        ),
    )(flattened, w_t, b_row)

    if B_pad != B:
        lin = lin[:B]
        prob = prob[:B]
    return lin, prob


if __name__ == "__main__":
    key = jax.random.PRNGKey(0)
    k_w, k_b, k_x = jax.random.split(key, 3)

    B = 8
    # Deterministic parameter init (shapes from the module __init__).
    weight = jax.random.normal(k_w, (10, 28 * 28), dtype=jnp.float32)
    bias = jax.random.normal(k_b, (10, 1), dtype=jnp.float32)
    # MNIST-like NCHW input.
    x = jax.random.normal(k_x, (B, 1, 28, 28), dtype=jnp.float32)

    lin, prob = simple_mnist_softmax(x, weight, bias)
    jax.block_until_ready((lin, prob))

    # Lightweight sanity check against pure-JAX reference.
    flat = x.reshape(B, -1)
    lin_ref = (weight @ flat.T + bias).T
    prob_ref = jax.nn.softmax(lin_ref, axis=1)
    assert lin.shape == (B, 10) and prob.shape == (B, 10)
    assert jnp.allclose(lin, lin_ref, atol=1e-3, rtol=1e-3)
    # approx=True reciprocal (EUP vrcp) slightly loosens softmax precision.
    assert jnp.allclose(prob, prob_ref, atol=1e-4, rtol=1e-3)

    print("KERNEL_OK")
</pallas_src>

<mosaic_0001>
module attributes {stable_mosaic.version = 11 : i64} {
  func.func @_softmax_linear_kernel(%arg0: i32, %arg1: memref<8x784xf32, #tpu.memory_space<vmem>>, %arg2: memref<784x10xf32, #tpu.memory_space<vmem>>, %arg3: memref<1x10xf32, #tpu.memory_space<vmem>>, %arg4: memref<8x10xf32, #tpu.memory_space<vmem>>, %arg5: memref<8x10xf32, #tpu.memory_space<vmem>>) attributes {dimension_semantics = [#tpu.dimension_semantics<parallel>], iteration_bounds = array<i64: 1>, scalar_prefetch = 0 : i64, scratch_operands = 0 : i64, tpu.core_type = #tpu.core_type<tc>, window_params = [{transform_indices = @transform_0, window_bounds = array<i64: 8, 784>}, {pipeline_mode = #tpu.pipeline_mode<synchronous>, transform_indices = @transform_1, window_bounds = array<i64: 784, 10>}, {pipeline_mode = #tpu.pipeline_mode<synchronous>, transform_indices = @transform_2, window_bounds = array<i64: 1, 10>}, {transform_indices = @transform_3, window_bounds = array<i64: 8, 10>}, {transform_indices = @transform_4, window_bounds = array<i64: 8, 10>}]} {
    %c0 = arith.constant 0 : index
    %c0_0 = arith.constant 0 : index
    %0 = vector.load %arg1[%c0, %c0_0] : memref<8x784xf32, #tpu.memory_space<vmem>>, vector<8x784xf32>
    %c0_1 = arith.constant 0 : index
    %c0_2 = arith.constant 0 : index
    %1 = vector.load %arg2[%c0_1, %c0_2] : memref<784x10xf32, #tpu.memory_space<vmem>>, vector<784x10xf32>
    %c0_3 = arith.constant 0 : index
    %c0_4 = arith.constant 0 : index
    %2 = vector.load %arg3[%c0_3, %c0_4] : memref<1x10xf32, #tpu.memory_space<vmem>>, vector<1x10xf32>
    %cst = arith.constant dense<0.000000e+00> : vector<8x10xf32>
    %3 = tpu.matmul %0, %1, %cst {dimension_numbers = #tpu.dot_dimension_numbers<[1], [0], [0], [1], [0, 0, 1, 1], [], []>} : vector<8x784xf32>, vector<784x10xf32>, vector<8x10xf32> -> vector<8x10xf32>
    %4 = vector.broadcast %2 : vector<1x10xf32> to vector<8x10xf32>
    %5 = arith.addf %3, %4 : vector<8x10xf32>
    %c0_5 = arith.constant 0 : index
    %c0_6 = arith.constant 0 : index
    %6 = vector.load %arg4[%c0_5, %c0_6] : memref<8x10xf32, #tpu.memory_space<vmem>>, vector<8x10xf32>
    tpu.vector_store %arg4[%c0_5, %c0_6], %5 {strides = array<i32>} : memref<8x10xf32, #tpu.memory_space<vmem>>, vector<8x10xf32>,
    %cst_7 = arith.constant dense<0xFF800000> : vector<8xf32>
    %7 = vector.multi_reduction <maximumf>, %5, %cst_7 [1] : vector<8x10xf32> to vector<8xf32>
    %8 = vector.shape_cast %7 : vector<8xf32> to vector<8x1xf32>
    %9 = vector.broadcast %8 : vector<8x1xf32> to vector<8x10xf32>
    %10 = arith.subf %5, %9 : vector<8x10xf32>
    %11 = math.exp %10 : vector<8x10xf32>
    %cst_8 = arith.constant dense<0.000000e+00> : vector<8xf32>
    %12 = vector.multi_reduction <add>, %11, %cst_8 [1] : vector<8x10xf32> to vector<8xf32>
    %13 = vector.shape_cast %12 : vector<8xf32> to vector<8x1xf32>
    %14 = tpu.reciprocal %13 {approx = true} : vector<8x1xf32> -> vector<8x1xf32>
    %15 = vector.broadcast %14 : vector<8x1xf32> to vector<8x10xf32>
    %16 = arith.mulf %11, %15 : vector<8x10xf32>
    %c0_9 = arith.constant 0 : index
    %c0_10 = arith.constant 0 : index
    %17 = vector.load %arg5[%c0_9, %c0_10] : memref<8x10xf32, #tpu.memory_space<vmem>>, vector<8x10xf32>
    tpu.vector_store %arg5[%c0_9, %c0_10], %16 {strides = array<i32>} : memref<8x10xf32, #tpu.memory_space<vmem>>, vector<8x10xf32>,
    return
  }
  func.func @transform_0(%arg0: i32) -> (i32, i32) {
    %c0_i32 = arith.constant 0 : i32
    %c0_i32_0 = arith.constant 0 : i32
    return %arg0, %c0_i32 : i32, i32
  }
  func.func @transform_1(%arg0: i32) -> (i32, i32) {
    %c0_i32 = arith.constant 0 : i32
    %c0_i32_0 = arith.constant 0 : i32
    %c0_i32_1 = arith.constant 0 : i32
    return %c0_i32, %c0_i32_0 : i32, i32
  }
  func.func @transform_2(%arg0: i32) -> (i32, i32) {
    %c0_i32 = arith.constant 0 : i32
    %c0_i32_0 = arith.constant 0 : i32
    %c0_i32_1 = arith.constant 0 : i32
    return %c0_i32, %c0_i32_0 : i32, i32
  }
  func.func @transform_3(%arg0: i32) -> (i32, i32) {
    %c0_i32 = arith.constant 0 : i32
    %c0_i32_0 = arith.constant 0 : i32
    return %arg0, %c0_i32 : i32, i32
  }
  func.func @transform_4(%arg0: i32) -> (i32, i32) {
    %c0_i32 = arith.constant 0 : i32
    %c0_i32_0 = arith.constant 0 : i32
    return %arg0, %c0_i32 : i32, i32
  }
}

</mosaic_0001>

<bundles_post_ra>
// kernel: tpu_custom_call.1
= control target key start
LH: loop header
LB: loop body
LE: loop exit
PB: predicated region body
PF: predicated region fallthrough
CT: control target
= control target key end

     0   :  { %10 = vsyncpa [#allocation3], 0  ;;  %s1105_s0 = inlined_call_operand.vmem [shape: f32[8,784], index: 0, kind: input, shape index: {}]   ;;  %s1106_s1 = inlined_call_operand.vmem [shape: f32[784,10], index: 1, kind: input, shape index: {}]   ;;  %s1107_s2 = inlined_call_operand.vmem [shape: f32[1,10], index: 2, kind: input, shape index: {}]   ;;  %s1108_s3 = inlined_call_operand.hbm [shape: f32[8,10], index: 3, kind: output, shape index: {0}]   ;;  %s1109_s4 = inlined_call_operand.hbm [shape: f32[8,10], index: 4, kind: output, shape index: {1}]  }
   0x1   :  { %v41_v0 = vld [vmem:[%s1106_s1 + $0x80] sm:$0xff]  ;;  %v42_v1 = vld [vmem:[%s1106_s1 + $0x88] sm:$0xff]  ;;  %v43_v11 = vld [vmem:[%s1106_s1 + $0x90] sm:$0xff] }
   0x2   :  { %v25_v2 = vld [vmem:[%s1106_s1] sm:$0xff]  ;;  %v573_v3 = vpack.c.bf16 %v42_v1, %v41_v0  ;;  %v26_v4 = vld [vmem:[%s1106_s1 + $0x8] sm:$0xff]  ;;  %v44_v13 = vld [vmem:[%s1106_s1 + $0x98] sm:$0xff] }
   0x3   :  { %v73_v5 = vld [vmem:[%s1106_s1 + $0x180] sm:$0xff]  ;;  %v74_v6 = vld [vmem:[%s1106_s1 + $0x188] sm:$0xff]  ;;  %v575_v7 = vpack.c.bf16 %v26_v4, %v25_v2  ;;  %v27_v14 = vld [vmem:[%s1106_s1 + $0x10] sm:$0xff]  ;;  %v577_v16 = vpack.c.bf16 %v44_v13, %v43_v11 }
   0x4   :  { %v605_v8 = vpack.c.bf16 %v74_v6, %v73_v5  ;;  %v57_v9 = vld [vmem:[%s1106_s1 + $0x100] sm:$0xff]  ;;  %v58_v10 = vld [vmem:[%s1106_s1 + $0x108] sm:$0xff]  ;;  %574 = vmatprep.subr.bf16.mxu0 %v573_v3  ;;  %v28_v15 = vld [vmem:[%s1106_s1 + $0x18] sm:$0xff] }
   0x5   :  { %v607_v12 = vpack.c.bf16 %v58_v10, %v57_v9  ;;  %576 = vmatpush3.bf16.msra.mxu0 %v575_v7  ;;  %v579_v17 = vpack.c.bf16 %v28_v15, %v27_v14  ;;  %v75_v18 = vld [vmem:[%s1106_s1 + $0x190] sm:$0xff]  ;;  %v76_v19 = vld [vmem:[%s1106_s1 + $0x198] sm:$0xff]  ;;  %v45_v23 = vld [vmem:[%s1106_s1 + $0xa0] sm:$0xff] }
   0x6   :  { %606 = vmatprep.subr.bf16.mxu1 %v605_v8  ;;  %v59_v20 = vld [vmem:[%s1106_s1 + $0x110] sm:$0xff]  ;;  %v609_v21 = vpack.c.bf16 %v76_v19, %v75_v18  ;;  %v60_v22 = vld [vmem:[%s1106_s1 + $0x118] sm:$0xff]  ;;  %v46_v24 = vld [vmem:[%s1106_s1 + $0xa8] sm:$0xff]  ;;  %578 = vmatprep.subr.bf16.mxu0 %v577_v16 }
   0x7   :  { %608 = vmatpush3.bf16.msra.mxu1 %v607_v12  ;;  %v611_v25 = vpack.c.bf16 %v60_v22, %v59_v20  ;;  %v581_v26 = vpack.c.bf16 %v46_v24, %v45_v23  ;;  %v29_v27 = vld [vmem:[%s1106_s1 + $0x20] sm:$0xff]  ;;  %v30_v28 = vld [vmem:[%s1106_s1 + $0x28] sm:$0xff]  ;;  %v47_v35 = vld [vmem:[%s1106_s1 + $0xb0] sm:$0xff] }
   0x8   :  { %v77_v29 = vld [vmem:[%s1106_s1 + $0x1a0] sm:$0xff]  ;;  %610 = vmatprep.subr.bf16.mxu1 %v609_v21  ;;  %v78_v30 = vld [vmem:[%s1106_s1 + $0x1a8] sm:$0xff]  ;;  %v583_v33 = vpack.c.bf16 %v30_v28, %v29_v27  ;;  %v48_v36 = vld [vmem:[%s1106_s1 + $0xb8] sm:$0xff] }
   0x9   :  { %v61_v31 = vld [vmem:[%s1106_s1 + $0x120] sm:$0xff]  ;;  %v62_v32 = vld [vmem:[%s1106_s1 + $0x128] sm:$0xff]  ;;  %580 = vmatpush3.bf16.msra.mxu0 %v579_v17  ;;  %v613_v34 = vpack.c.bf16 %v78_v30, %v77_v29  ;;  %v31_v37 = vld [vmem:[%s1106_s1 + $0x30] sm:$0xff]  ;;  %v585_v39 = vpack.c.bf16 %v48_v36, %v47_v35 }
   0xa   :  { %582 = vmatprep.subr.bf16.mxu0 %v581_v26  ;;  %v615_v38 = vpack.c.bf16 %v62_v32, %v61_v31  ;;  %v32_v40 = vld [vmem:[%s1106_s1 + $0x38] sm:$0xff]  ;;  %v79_v41 = vld [vmem:[%s1106_s1 + $0x1b0] sm:$0xff]  ;;  %v49_v46 = vld [vmem:[%s1106_s1 + $0xc0] sm:$0xff] }
   0xb   :  { %612 = vmatpush3.bf16.msra.mxu1 %v611_v25  ;;  %v80_v42 = vld [vmem:[%s1106_s1 + $0x1b8] sm:$0xff]  ;;  %v63_v44 = vld [vmem:[%s1106_s1 + $0x130] sm:$0xff]  ;;  %v50_v47 = vld [vmem:[%s1106_s1 + $0xc8] sm:$0xff]  ;;  %v587_v48 = vpack.c.bf16 %v32_v40, %v31_v37 }
   0xc   :  { %614 = vmatprep.subr.bf16.mxu1 %v613_v34  ;;  %v617_v43 = vpack.c.bf16 %v80_v42, %v79_v41  ;;  %v64_v45 = vld [vmem:[%s1106_s1 + $0x138] sm:$0xff]  ;;  %v81_v49 = vld [vmem:[%s1106_s1 + $0x1c0] sm:$0xff]  ;;  %v82_v50 = vld [vmem:[%s1106_s1 + $0x1c8] sm:$0xff]  ;;  %v589_v52 = vpack.c.bf16 %v50_v47, %v49_v46 }
   0xd   :  { %584 = vmatpush3.bf16.msra.mxu0 %v583_v33  ;;  %v619_v51 = vpack.c.bf16 %v64_v45, %v63_v44  ;;  %v33_v53 = vld [vmem:[%s1106_s1 + $0x40] sm:$0xff]  ;;  %v34_v54 = vld [vmem:[%s1106_s1 + $0x48] sm:$0xff]  ;;  %v621_v56 = vpack.c.bf16 %v82_v50, %v81_v49  ;;  %v51_v58 = vld [vmem:[%s1106_s1 + $0xd0] sm:$0xff]  ;;  %v729_v50 = vmov 0.0|0.0  }
   0xe   :  { %586 = vmatprep.subr.bf16.mxu0 %v585_v39  ;;  %v65_v55 = vld [vmem:[%s1106_s1 + $0x140] sm:$0xff]  ;;  %v66_v57 = vld [vmem:[%s1106_s1 + $0x148] sm:$0xff]  ;;  %v52_v59 = vld [vmem:[%s1106_s1 + $0xd8] sm:$0xff]  ;;  %v591_v62 = vpack.c.bf16 %v34_v54, %v33_v53 }
   0xf   :  { %616 = vmatpush3.bf16.msra.mxu1 %v615_v38  ;;  %v83_v60 = vld [vmem:[%s1106_s1 + $0x1d0] sm:$0xff]  ;;  %v84_v61 = vld [vmem:[%s1106_s1 + $0x1d8] sm:$0xff]  ;;  %v623_v63 = vpack.c.bf16 %v66_v57, %v65_v55  ;;  %v593_v0 = vpack.c.bf16 %v52_v59, %v51_v58  ;;  %v53_v6 = vld [vmem:[%s1106_s1 + $0xe0] sm:$0xff] }
  0x10   :  { %618 = vmatprep.subr.bf16.mxu1 %v617_v43  ;;  %v35_v1 = vld [vmem:[%s1106_s1 + $0x50] sm:$0xff]  ;;  %v36_v2 = vld [vmem:[%s1106_s1 + $0x58] sm:$0xff]  ;;  %v625_v4 = vpack.c.bf16 %v84_v61, %v83_v60  ;;  %v54_v7 = vld [vmem:[%s1106_s1 + $0xe8] sm:$0xff] }
  0x11   :  { %588 = vmatpush3.bf16.msra.mxu0 %v587_v48  ;;  %v67_v3 = vld [vmem:[%s1106_s1 + $0x150] sm:$0xff]  ;;  %v68_v5 = vld [vmem:[%s1106_s1 + $0x158] sm:$0xff]  ;;  %v85_v8 = vld [vmem:[%s1106_s1 + $0x1e0] sm:$0xff]  ;;  %v595_v10 = vpack.c.bf16 %v36_v2, %v35_v1  ;;  %v597_v14 = vpack.c.bf16 %v54_v7, %v53_v6 }
  0x12   :  { %590 = vmatprep.subr.bf16.mxu0 %v589_v52  ;;  %v86_v9 = vld [vmem:[%s1106_s1 + $0x1e8] sm:$0xff]  ;;  %v37_v11 = vld [vmem:[%s1106_s1 + $0x60] sm:$0xff]  ;;  %v627_v13 = vpack.c.bf16 %v68_v5, %v67_v3  ;;  %v55_v19 = vld [vmem:[%s1106_s1 + $0xf0] sm:$0xff] }
  0x13   :  { %620 = vmatpush3.bf16.msra.mxu1 %v619_v51  ;;  %v19_v12 = vld [vmem:[%s1105_s0 + $0x8] sm:$0xff]  ;;  %v69_v16 = vld [vmem:[%s1106_s1 + $0x160] sm:$0xff]  ;;  %v629_v18 = vpack.c.bf16 %v86_v9, %v85_v8  ;;  %v56_v20 = vld [vmem:[%s1106_s1 + $0xf8] sm:$0xff] }
  0x14   :  { %622 = vmatprep.subr.bf16.mxu1 %v621_v56  ;;  %v38_v15 = vld [vmem:[%s1106_s1 + $0x68] sm:$0xff]  ;;  %198 = vmatprep.mubr.f32.mxu0 %v19_v12  ;;  %v21_v21 = vld [vmem:[%s1105_s0 + $0x18] sm:$0xff]  ;;  %v87_v22 = vld [vmem:[%s1106_s1 + $0x1f0] sm:$0xff]  ;;  %v601_v26 = vpack.c.bf16 %v56_v20, %v55_v19 }
  0x15   :  { %592 = vmatpush3.bf16.msra.mxu0 %v591_v62  ;;  %v70_v17 = vld [vmem:[%s1106_s1 + $0x168] sm:$0xff]  ;;  %v88_v23 = vld [vmem:[%s1106_s1 + $0x1f8] sm:$0xff]  ;;  %268 = vmatprep.mubr.f32.mxu1 %v21_v21  ;;  %v599_v24 = vpack.c.bf16 %v38_v15, %v37_v11  ;;  %v39_v27 = vld [vmem:[%s1106_s1 + $0x70] sm:$0xff] }
  0x16   :  { %594 = vmatprep.subr.bf16.mxu0 %v593_v0  ;;  %v631_v25 = vpack.c.bf16 %v70_v17, %v69_v16  ;;  %v40_v28 = vld [vmem:[%s1106_s1 + $0x78] sm:$0xff]  ;;  %v71_v29 = vld [vmem:[%s1106_s1 + $0x170] sm:$0xff]  ;;  %v633_v30 = vpack.c.bf16 %v88_v23, %v87_v22  ;;  %v105_v32 = vld [vmem:[%s1106_s1 + $0x280] sm:$0xff] }
  0x17   :  { %624 = vmatpush3.bf16.msra.mxu1 %v623_v63  ;;  %v72_v31 = vld [vmem:[%s1106_s1 + $0x178] sm:$0xff]  ;;  %v106_v33 = vld [vmem:[%s1106_s1 + $0x288] sm:$0xff]  ;;  %v603_v34 = vpack.c.bf16 %v40_v28, %v39_v27  ;;  %v89_v37 = vld [vmem:[%s1106_s1 + $0x200] sm:$0xff] }
  0x18   :  { %626 = vmatprep.subr.bf16.mxu1 %v625_v4  ;;  %v635_v35 = vpack.c.bf16 %v72_v31, %v71_v29  ;;  %v637_v36 = vpack.c.bf16 %v106_v33, %v105_v32  ;;  %v90_v38 = vld [vmem:[%s1106_s1 + $0x208] sm:$0xff]  ;;  %v107_v39 = vld [vmem:[%s1106_s1 + $0x290] sm:$0xff]  ;;  %v108_v40 = vld [vmem:[%s1106_s1 + $0x298] sm:$0xff] }
  0x19   :  { %596 = vmatpush3.bf16.msra.mxu0 %v595_v10  ;;  %v18_v41 = vld [vmem:[%s1105_s0] sm:$0xff]  ;;  %v639_v42 = vpack.c.bf16 %v90_v38, %v89_v37  ;;  %v20_v43 = vld [vmem:[%s1105_s0 + $0x10] sm:$0xff]  ;;  %v641_v45 = vpack.c.bf16 %v108_v40, %v107_v39  ;;  %v92_v46 = vld [vmem:[%s1106_s1 + $0x218] sm:$0xff] }
  0x1a   :  { %598 = vmatprep.subr.bf16.mxu0 %v597_v14  ;;  %v91_v44 = vld [vmem:[%s1106_s1 + $0x210] sm:$0xff]  ;;  %v109_v47 = vld [vmem:[%s1106_s1 + $0x2a0] sm:$0xff]  ;;  %v110_v48 = vld [vmem:[%s1106_s1 + $0x2a8] sm:$0xff] }
  0x1b   :  { %628 = vmatpush3.bf16.msra.mxu1 %v627_v13  ;;  %v23_v49 = vld [vmem:[%s1105_s0 + $0x28] sm:$0xff]  ;;  %v121_v51 = vld [vmem:[%s1106_s1 + $0x300] sm:$0xff] }
  0x1c   :  { %630 = vmatprep.subr.bf16.mxu1 %v629_v18  ;;  %v122_v52 = vld [vmem:[%s1106_s1 + $0x308] sm:$0xff] }
  0x1d   :  { %600 = vmatpush3.bf16.msra.mxu0 %v599_v24  ;;  %v670_v53 = vpack.c.bf16 %v122_v52, %v121_v51 }
  0x1e   :  { %602 = vmatprep.subr.bf16.mxu0 %v601_v26 }
  0x1f   :  { %632 = vmatpush3.bf16.msra.mxu1 %v631_v25 }
  0x20   :  { %634 = vmatprep.subr.bf16.mxu1 %v633_v30 }
  0x21   :  { %604 = vmatpush3.bf16.msra.mxu0 %v603_v34 }
  0x22   :  { %638 = vmatprep.subr.bf16.mxu0 %v637_v36 }
  0x23   :  { %636 = vmatpush3.bf16.msra.mxu1 %v635_v35 }
  0x24   :  { %669 = vmatprep.subr.bf16.mxu1 %v729_v50  ;;  %199 = vmatmul.mubr.f32.vlgmr.msra.gmra.mrb[0].mxu0 %v18_v41 }
  0x25   :  { %11 = vsyncpa [#allocation5], 0  ;;  %640 = vmatpush3.bf16.msra.mxu0 %v639_v42  ;;  %v643_v54 = vpack.c.bf16 %v92_v46, %v91_v44  ;;  %v645_v55 = vpack.c.bf16 %v110_v48, %v109_v47  ;;  %v93_v56 = vld [vmem:[%s1106_s1 + $0x220] sm:$0xff]  ;;  %v94_v57 = vld [vmem:[%s1106_s1 + $0x228] sm:$0xff]  ;;  %338 = vmatprep.mubr.f32.mxu0 %v23_v49  ;;  %vm730_vm0 = vmmov 0   ;;  %v731_v60 = vmov 0.0  }
  0x26   :  { %269 = vmatmul.mubr.f32.vlgmr.msra.gmra.mrb[0].mxu1 %v20_v43  ;;  %642 = vmatprep.subr.bf16.mxu0 %v641_v45  ;;  %v111_v58 = vld [vmem:[%s1106_s1 + $0x2b0] sm:$0xff]  ;;  %v112_v59 = vld [vmem:[%s1106_s1 + $0x2b8] sm:$0xff]  ;;  %vm130_vm1 = vcmask 130048   ;;  %v647_v62 = vpack.c.bf16 %v94_v57, %v93_v56  ;;  %v113_v2 = vld [vmem:[%s1106_s1 + $0x2c0] sm:$0xff]  ;;  %vm414_vm2 = vcmask 80896  }
  0x27   :  { %671 = vmatpush3.bf16.msra.mxu1 %v670_v53  ;;  %570 = vmatprep.mubr.msk.f32.mxu1 %vm730_vm0, %v731_v60  ;;  %v24_v61 = vld [vmem:[%s1105_s0 + $0x30] sm:$0xff]  ;;  %v649_v63 = vpack.c.bf16 %v112_v59, %v111_v58  ;;  %v96_v1 = vld [vmem:[%s1106_s1 + $0x238] sm:$0xff]  ;;  %v114_v3 = vld [vmem:[%s1106_s1 + $0x2c8] sm:$0xff] }
  0x28   :  { %v95_v0 = vld [vmem:[%s1106_s1 + $0x230] sm:$0xff]  ;;  %v653_v5 = vpack.c.bf16 %v114_v3, %v113_v2  ;;  %v97_v6 = vld [vmem:[%s1106_s1 + $0x240] sm:$0xff]  ;;  %v98_v7 = vld [vmem:[%s1106_s1 + $0x248] sm:$0xff] }
  0x29   :  { %644 = vmatpush3.bf16.msra.mxu0 %v643_v54  ;;  %v651_v4 = vpack.c.bf16 %v96_v1, %v95_v0  ;;  %v115_v8 = vld [vmem:[%s1106_s1 + $0x2d0] sm:$0xff]  ;;  %v116_v9 = vld [vmem:[%s1106_s1 + $0x2d8] sm:$0xff]  ;;  %v655_v10 = vpack.c.bf16 %v98_v7, %v97_v6  ;;  %v117_v14 = vld [vmem:[%s1106_s1 + $0x2e0] sm:$0xff] }
  0x2a   :  { %646 = vmatprep.subr.bf16.mxu0 %v645_v55  ;;  %571 = vmatmul.mubr.msk.f32.vlgmr.msra.gmra.mrb[2].mxu1 %vm130_vm1, %v24_v61  ;;  %v657_v11 = vpack.c.bf16 %v116_v9, %v115_v8  ;;  %v99_v12 = vld [vmem:[%s1106_s1 + $0x250] sm:$0xff]  ;;  %v100_v13 = vld [vmem:[%s1106_s1 + $0x258] sm:$0xff]  ;;  %v118_v15 = vld [vmem:[%s1106_s1 + $0x2e8] sm:$0xff] }
  0x2b   :  { %v659_v16 = vpack.c.bf16 %v100_v13, %v99_v12  ;;  %v661_v17 = vpack.c.bf16 %v118_v15, %v117_v14  ;;  %v101_v18 = vld [vmem:[%s1106_s1 + $0x260] sm:$0xff]  ;;  %v102_v19 = vld [vmem:[%s1106_s1 + $0x268] sm:$0xff]  ;;  %v119_v20 = vld [vmem:[%s1106_s1 + $0x2f0] sm:$0xff] }
  0x2c   :  { %v120_v21 = vld [vmem:[%s1106_s1 + $0x2f8] sm:$0xff]  ;;  %v663_v22 = vpack.c.bf16 %v102_v19, %v101_v18  ;;  %v103_v24 = vld [vmem:[%s1106_s1 + $0x270] sm:$0xff]  ;;  %v22_v27 = vld [vmem:[%s1105_s0 + $0x20] sm:$0xff]  ;;  %s732_s0 = smov [#allocation2]  }
  0x2d   :  { %648 = vmatpush3.bf16.msra.mxu0 %v647_v62  ;;  %v665_v23 = vpack.c.bf16 %v120_v21, %v119_v20  ;;  %v104_v25 = vld [vmem:[%s1106_s1 + $0x278] sm:$0xff]  ;;  %v456_v29 = vld [vmem:[%s1107_s2] ss:$0 sm:$0xff]  ;;  %s434_s1 = sshll.u32 %s732_s0, 4  ;;  %s435_s1 = int_to_ptr.vmem [resolvable:$true] %s434_s1 }
  0x2e   :  { %650 = vmatprep.subr.bf16.mxu0 %v649_v63  ;;  %v667_v26 = vpack.c.bf16 %v104_v25, %v103_v24  ;;  %s681_s2 = scalar_lea.vmem %s435_s1, 128  ;;  %p686_p1 = scmp.lt.s32.totalorder %s435_s1, %s435_s1 }
  0x2f   :  { %p682_p0 = scmp.ne.s32.totalorder %s435_s1, %s681_s2  ;;  %p687_p2 = scmp.lt.s32.totalorder %s681_s2, %s681_s2 }
  0x31   :  { %652 = vmatpush3.bf16.msra.mxu0 %v651_v4  ;;  %p688_p3 = por %p687_p2, %p686_p1 }
  0x32   :  { %654 = vmatprep.subr.bf16.mxu0 %v653_v5 }
  0x33   :  { %p689_p4 = pnand %p688_p3, %p682_p0 }
  0x35   :  { %656 = vmatpush3.bf16.msra.mxu0 %v655_v10 }
  0x36   :  { %658 = vmatprep.subr.bf16.mxu0 %v657_v11 }
  0x39   :  { %660 = vmatpush3.bf16.msra.mxu0 %v659_v16 }
  0x3a   :  { %662 = vmatprep.subr.bf16.mxu0 %v661_v17 }
  0x3d   :  { %664 = vmatpush3.bf16.msra.mxu0 %v663_v22 }
  0x3e   :  { %666 = vmatprep.subr.bf16.mxu0 %v665_v23 }
  0x41   :  { %668 = vmatpush3.bf16.msra.mxu0 %v667_v26 }
  0x44   :  { %339 = vmatmul.mubr.f32.vlgmr.msra.gmra.mrb[2].mxu0 %v22_v27 }
  0xf7   :  { %v490_v28 = vpop.f32.mrb[0].mxu0 }
  0xf8   :  { %v491_v30 = vpop.f32.mrb[1].mxu0 }
  0xf9   :  { %v525_v31 = vpop.f32.mrb[0].mxu1  ;;  %v492_v32 = vadd.f32 %v491_v30, %v490_v28 }
  0xfa   :  { %v526_v33 = vpop.f32.mrb[1].mxu1 }
  0xfb   :  { %v527_v34 = vadd.f32 %v526_v33, %v525_v31  ;;  %v201_v35 = vadd.f32 %v492_v32, %v456_v29 }
  0xfd   :  { %v271_v36 = vadd.f32 %v527_v34, %v201_v35  ;;  %v410_v37 = vpop.f32.mrb[2].mxu1 }
  0xfe   :  { %v572_v38 = vpop.f32.mrb[3].mxu1 }
 0x117   :  { %v560_v39 = vpop.f32.mrb[2].mxu0 }
 0x118   :  { %v561_v40 = vpop.f32.mrb[3].mxu0 }
 0x119   :  { %v562_v41 = vadd.f32 %v561_v40, %v560_v39 }
 0x11b   :  { %v341_v42 = vadd.f32 %v562_v41, %v271_v36 }
 0x11d   :  { %v411_v43 = vadd.f32 %v410_v37, %v341_v42 }
 0x11f   :  { %v416_v44 = vsel %vm414_vm2, %v411_v43, -inf  ;;  %415 = vst.msk [vmem:[#allocation2] sm:$0xff] %vm414_vm2, %v411_v43 }
 0x120   :  { %417 = vmax.xlane.f32.xlu0 %v416_v44 }
 0x1ad   :  { %v418_v45 = vpop.xlane.xlu0 %417 }
 0x1ae   :  { %v419_v46 = vsub.f32 %v411_v43, %v418_v45 }
 0x1b0   :  { %v420_v47 = vmul.f32 1.442695, %v419_v46 }
 0x1b2   :  { %677 = vpow2.f32 %v420_v47 }
 0x1bc   :  { %v678_v48 = vpop.eup %677 }
 0x1bd   :  { %v422_v49 = vsel %vm414_vm2, %v678_v48, 0.0 }
 0x1be   :  { %423 = vadd.xlane.f32.xlu0 %v422_v49 }
 0x1bf   :  { %692 = shalt.err (!%p689_p4)
}
 0x1c0   :  { %s693_s21 = scalar_lea.hbm %s1108_s3, 128 }
 0x1c1   :  { %p694_p5 = scmp.ne.s32.totalorder %s1108_s3, %s693_s21  ;;  %p697_p6 = scmp.lt.u32.totalorder %s693_s21, %s1108_s3 }
 0x1c3   :  { %p699_p7 = pnand %p697_p6, %p694_p5 }
 0x1c5   :  { %702 = shalt.err (!%p699_p7)
}
 0x1c6   :  { %437 = dma.vmem_to_hbm [thread:$0]  %s435_s1, 128, %s1108_s3, [#allocation3]  }
 0x1c7   :  { %s733_s28 = smov [#allocation4]  }
 0x1c8   :  { %s444_s29 = sshll.u32 %s733_s28, 4  ;;  %s445_s29 = int_to_ptr.vmem [resolvable:$true] %s444_s29 }
 0x1c9   :  { %s703_s30 = scalar_lea.vmem %s445_s29, 128  ;;  %p708_p9 = scmp.lt.s32.totalorder %s445_s29, %s445_s29 }
 0x1ca   :  { %p704_p8 = scmp.ne.s32.totalorder %s445_s29, %s703_s30  ;;  %p709_p10 = scmp.lt.s32.totalorder %s703_s30, %s703_s30 }
 0x1cc   :  { %p710_p11 = por %p709_p10, %p708_p9 }
 0x1ce   :  { %p711_p12 = pnand %p710_p11, %p704_p8 }
 0x24b   :  { %v424_v50 = vpop.xlane.xlu0 %423 }
 0x24c   :  { %679 = vrcp.f32 %v424_v50 }
 0x256   :  { %v680_v51 = vpop.eup %679 }
 0x257   :  { %v426_v52 = vmul.f32 %v680_v51, %v678_v48 }
 0x259   :  { %427 = vst.msk [vmem:[#allocation4] sm:$0xff] %vm414_vm2, %v426_v52 }
 0x25a   :  { %714 = shalt.err (!%p711_p12)
}
 0x25b   :  { %s715_s3 = scalar_lea.hbm %s1109_s4, 128 }
 0x25c   :  { %p716_p13 = scmp.ne.s32.totalorder %s1109_s4, %s715_s3  ;;  %p719_p0 = scmp.lt.u32.totalorder %s715_s3, %s1109_s4 }
 0x25e   :  { %p721_p1 = pnand %p719_p0, %p716_p13 }
 0x260   :  { %724 = shalt.err (!%p721_p1)
}
 0x261   :  { %447 = dma.vmem_to_hbm [thread:$0]  %s445_s29, 128, %s1109_s4, [#allocation5]  }
 0x262   :  { %725 = dma.done.wait [#allocation3], 128  }
 0x263   :  { %726 = vsyncadd [#allocation3], 4294967168 }
 0x264   :  { %727 = dma.done.wait [#allocation5], 128  }
 0x265   :  { %728 = vsyncadd [#allocation5], 4294967168 }
 0x266   :  { %454 = vsyncpa [#allocation3], 1 }
 0x267   :  { %455 = vsyncpa [#allocation5], 1 }

</bundles_post_ra>
